<compile_context>
chip_gen: v7x
topology: tpu7x:2x2x1
jax: 0.10.0
libtpu: 0.0.40
codegen_flags: <defaults>
</compile_context>

<pallas_src>
import jax
import jax.numpy as jnp
from jax.experimental import pallas as pl
from jax.experimental.pallas import tpu as pltpu


def _round_up(x, m):
    return (x + m - 1) // m * m


def _sigmoid_tanh(x):
    # sigmoid(x) == 0.5 * tanh(0.5 * x) + 0.5  -- one EUP op, no divide.
    return 0.5 * jnp.tanh(0.5 * x) + 0.5


def _rbm_forward_kernel(v_ref, w_ref, wt_ref, hb_ref, vb_ref, vrec_ref):
    """Fused RBM forward for one batch tile.

    v_ref   : [TM, Vp]  bf16 visible units (zero-padded)
    w_ref   : [Vp, Hp]  bf16 weights (VMEM-resident across grid steps)
    wt_ref  : [Hp, Vp]  bf16 pre-transposed weights (VMEM-resident)
    hb_ref  : [1,  Hp]  f32 hidden bias
    vb_ref  : [1,  Vp]  f32 visible bias
    vrec_ref: [TM, Vp]  bf16 reconstruction output
    """
    # Hidden activations: [TM, Hp], bf16 MXU matmul with f32 accumulation.
    h_lin = jnp.dot(v_ref[...], w_ref[...],
                    preferred_element_type=jnp.float32) + hb_ref[...]
    h = _sigmoid_tanh(h_lin)

    # Reconstruction: [TM, Vp] = [TM, Hp] @ [Hp, Vp] (transpose hoisted to the
    # wrapper, so no per-tile XLU transpose).
    v_lin = jnp.dot(h.astype(jnp.bfloat16), wt_ref[...],
                    preferred_element_type=jnp.float32) + vb_ref[...]
    vrec_ref[...] = _sigmoid_tanh(v_lin).astype(vrec_ref.dtype)


def qmodel_forward(x_nchw, weights, hidden_bias, visible_bias, *, tm=128):
    """Pallas-backed QModel forward (RBM reconstruction).

    x_nchw : [B, C, H, W] float32 (binarized MNIST-style input)
    returns the reconstructed visible units reshaped back to [B, C, H, W].
    """
    B, C, H, W = x_nchw.shape
    V = C * H * W
    n_hidden = weights.shape[1]
    assert weights.shape == (V, n_hidden)

    # Adapt the batch tile to the real batch (sublane-aligned), then pad.
    tm = min(tm, _round_up(B, 8))

    # Lane-dense padding: V / n_hidden to multiples of 128, batch to TM.
    Vp = _round_up(V, 128)
    Hp = _round_up(n_hidden, 128)
    Bp = _round_up(B, tm)

    v = x_nchw.reshape(B, V)
    v = jnp.pad(v, ((0, Bp - B), (0, Vp - V))).astype(jnp.bfloat16)

    w = jnp.pad(weights.astype(jnp.float32),
                ((0, Vp - V), (0, Hp - n_hidden))).astype(jnp.bfloat16)
    wt = w.T  # one-time transpose in the wrapper, reused by every grid step

    hb = jnp.pad(hidden_bias.astype(jnp.float32),
                 (0, Hp - n_hidden)).reshape(1, Hp)
    vb = jnp.pad(visible_bias.astype(jnp.float32),
                 (0, Vp - V)).reshape(1, Vp)

    grid = (Bp // tm,)

    v_rec = pl.pallas_call(
        _rbm_forward_kernel,
        out_shape=jax.ShapeDtypeStruct((Bp, Vp), jnp.bfloat16),
        grid_spec=pltpu.PrefetchScalarGridSpec(
            num_scalar_prefetch=0,
            grid=grid,
            in_specs=[
                pl.BlockSpec((tm, Vp), lambda i: (i, 0)),   # v: tiled over batch
                pl.BlockSpec((Vp, Hp), lambda i: (0, 0)),   # W: resident
                pl.BlockSpec((Hp, Vp), lambda i: (0, 0)),   # W.T: resident
                pl.BlockSpec((1, Hp), lambda i: (0, 0)),    # hidden bias
                pl.BlockSpec((1, Vp), lambda i: (0, 0)),    # visible bias
            ],
            out_specs=pl.BlockSpec((tm, Vp), lambda i: (i, 0)),
        ),
        compiler_params=pltpu.CompilerParams(
            dimension_semantics=("parallel",),      # shard batch tiles over TCs
            vmem_limit_bytes=64 * 1024 * 1024,
        ),
    )(v, w, wt, hb, vb)

    # Strip padding, upcast, and restore NCHW.
    v_rec = v_rec[:B, :V].astype(jnp.float32)
    return v_rec.reshape(B, C, H, W)


def _reference_forward(x_nchw, weights, hidden_bias, visible_bias):
    B, C, H, W = x_nchw.shape
    v = x_nchw.reshape(B, -1).astype(jnp.float32)
    h = jax.nn.sigmoid(v @ weights + hidden_bias[None, :])
    v_rec = jax.nn.sigmoid(h @ weights.T + visible_bias[None, :])
    return v_rec.reshape(B, C, H, W)


if __name__ == "__main__":
    # Small MNIST-like shapes: batch=8, 1 channel, 16x16 image -> 256 visible
    # units; n_hidden = 128 (already lane-aligned; the padding path handles
    # e.g. 28x28=784 -> 896 transparently).
    B, C, Himg, Wimg = 8, 1, 16, 16
    V = C * Himg * Wimg
    n_hidden = 128

    key = jax.random.PRNGKey(0)
    k_x, k_w = jax.random.split(key)

    # Binarized input (mirrors ThresholdTransform at thr=128/255 on [0,1] data).
    x_raw = jax.random.uniform(k_x, (B, C, Himg, Wimg), dtype=jnp.float32)
    x = (x_raw > (128.0 / 255.0)).astype(jnp.float32)

    # Deterministic RBM parameter init (weights ~ N(0, 0.01), zero biases).
    weights = 0.01 * jax.random.normal(k_w, (V, n_hidden), dtype=jnp.float32)
    hidden_bias = jnp.zeros((n_hidden,), dtype=jnp.float32)
    visible_bias = jnp.zeros((V,), dtype=jnp.float32)

    out = qmodel_forward(x, weights, hidden_bias, visible_bias)
    out = jax.block_until_ready(out)

    ref = _reference_forward(x, weights, hidden_bias, visible_bias)
    assert out.shape == x.shape
    # bf16 MXU inputs + bf16 output store -> loosened tolerance vs f32 reference.
    assert jnp.allclose(out, ref, atol=2e-2, rtol=2e-2), float(
        jnp.max(jnp.abs(out - ref)))

    print("KERNEL_OK")
</pallas_src>

<mosaic_0001>
module attributes {stable_mosaic.version = 11 : i64} {
  func.func @_rbm_forward_kernel(%arg0: i32, %arg1: memref<8x256xbf16, #tpu.memory_space<vmem>>, %arg2: memref<256x128xbf16, #tpu.memory_space<vmem>>, %arg3: memref<128x256xbf16, #tpu.memory_space<vmem>>, %arg4: memref<1x128xf32, #tpu.memory_space<vmem>>, %arg5: memref<1x256xf32, #tpu.memory_space<vmem>>, %arg6: memref<8x256xbf16, #tpu.memory_space<vmem>>) attributes {dimension_semantics = [#tpu.dimension_semantics<parallel>], iteration_bounds = array<i64: 1>, scalar_prefetch = 0 : i64, scratch_operands = 0 : i64, tpu.core_type = #tpu.core_type<tc>, window_params = [{transform_indices = @transform_0, window_bounds = array<i64: 8, 256>}, {pipeline_mode = #tpu.pipeline_mode<synchronous>, transform_indices = @transform_1, window_bounds = array<i64: 256, 128>}, {pipeline_mode = #tpu.pipeline_mode<synchronous>, transform_indices = @transform_2, window_bounds = array<i64: 128, 256>}, {pipeline_mode = #tpu.pipeline_mode<synchronous>, transform_indices = @transform_3, window_bounds = array<i64: 1, 128>}, {pipeline_mode = #tpu.pipeline_mode<synchronous>, transform_indices = @transform_4, window_bounds = array<i64: 1, 256>}, {transform_indices = @transform_5, window_bounds = array<i64: 8, 256>}]} {
    %c0 = arith.constant 0 : index
    %c0_0 = arith.constant 0 : index
    %0 = vector.load %arg1[%c0, %c0_0] : memref<8x256xbf16, #tpu.memory_space<vmem>>, vector<8x256xbf16>
    %c0_1 = arith.constant 0 : index
    %c0_2 = arith.constant 0 : index
    %1 = vector.load %arg2[%c0_1, %c0_2] : memref<256x128xbf16, #tpu.memory_space<vmem>>, vector<256x128xbf16>
    %cst = arith.constant dense<0.000000e+00> : vector<8x128xf32>
    %2 = tpu.matmul %0, %1, %cst {dimension_numbers = #tpu.dot_dimension_numbers<[1], [0], [0], [1], [0, 0, 1, 1], [], []>} : vector<8x256xbf16>, vector<256x128xbf16>, vector<8x128xf32> -> vector<8x128xf32>
    %c0_3 = arith.constant 0 : index
    %c0_4 = arith.constant 0 : index
    %3 = vector.load %arg4[%c0_3, %c0_4] : memref<1x128xf32, #tpu.memory_space<vmem>>, vector<1x128xf32>
    %4 = vector.broadcast %3 : vector<1x128xf32> to vector<8x128xf32>
    %5 = arith.addf %2, %4 : vector<8x128xf32>
    %cst_5 = arith.constant 5.000000e-01 : f32
    %6 = vector.broadcast %cst_5 : f32 to vector<8x128xf32>
    %7 = arith.mulf %6, %5 : vector<8x128xf32>
    %8 = math.tanh %7 : vector<8x128xf32>
    %cst_6 = arith.constant 5.000000e-01 : f32
    %9 = vector.broadcast %cst_6 : f32 to vector<8x128xf32>
    %10 = arith.mulf %9, %8 : vector<8x128xf32>
    %cst_7 = arith.constant 5.000000e-01 : f32
    %11 = vector.broadcast %cst_7 : f32 to vector<8x128xf32>
    %12 = arith.addf %10, %11 : vector<8x128xf32>
    %13 = arith.truncf %12 : vector<8x128xf32> to vector<8x128xbf16>
    %c0_8 = arith.constant 0 : index
    %c0_9 = arith.constant 0 : index
    %14 = vector.load %arg3[%c0_8, %c0_9] : memref<128x256xbf16, #tpu.memory_space<vmem>>, vector<128x256xbf16>
    %cst_10 = arith.constant dense<0.000000e+00> : vector<8x256xf32>
    %15 = tpu.matmul %13, %14, %cst_10 {dimension_numbers = #tpu.dot_dimension_numbers<[1], [0], [0], [1], [0, 0, 1, 1], [], []>} : vector<8x128xbf16>, vector<128x256xbf16>, vector<8x256xf32> -> vector<8x256xf32>
    %c0_11 = arith.constant 0 : index
    %c0_12 = arith.constant 0 : index
    %16 = vector.load %arg5[%c0_11, %c0_12] : memref<1x256xf32, #tpu.memory_space<vmem>>, vector<1x256xf32>
    %17 = vector.broadcast %16 : vector<1x256xf32> to vector<8x256xf32>
    %18 = arith.addf %15, %17 : vector<8x256xf32>
    %cst_13 = arith.constant 5.000000e-01 : f32
    %19 = vector.broadcast %cst_13 : f32 to vector<8x256xf32>
    %20 = arith.mulf %19, %18 : vector<8x256xf32>
    %21 = math.tanh %20 : vector<8x256xf32>
    %cst_14 = arith.constant 5.000000e-01 : f32
    %22 = vector.broadcast %cst_14 : f32 to vector<8x256xf32>
    %23 = arith.mulf %22, %21 : vector<8x256xf32>
    %cst_15 = arith.constant 5.000000e-01 : f32
    %24 = vector.broadcast %cst_15 : f32 to vector<8x256xf32>
    %25 = arith.addf %23, %24 : vector<8x256xf32>
    %26 = arith.truncf %25 : vector<8x256xf32> to vector<8x256xbf16>
    %c0_16 = arith.constant 0 : index
    %c0_17 = arith.constant 0 : index
    %27 = vector.load %arg6[%c0_16, %c0_17] : memref<8x256xbf16, #tpu.memory_space<vmem>>, vector<8x256xbf16>
    tpu.vector_store %arg6[%c0_16, %c0_17], %26 {strides = array<i32>} : memref<8x256xbf16, #tpu.memory_space<vmem>>, vector<8x256xbf16>,
    return
  }
  func.func @transform_0(%arg0: i32) -> (i32, i32) {
    %c0_i32 = arith.constant 0 : i32
    %c0_i32_0 = arith.constant 0 : i32
    return %arg0, %c0_i32 : i32, i32
  }
  func.func @transform_1(%arg0: i32) -> (i32, i32) {
    %c0_i32 = arith.constant 0 : i32
    %c0_i32_0 = arith.constant 0 : i32
    %c0_i32_1 = arith.constant 0 : i32
    return %c0_i32, %c0_i32_0 : i32, i32
  }
  func.func @transform_2(%arg0: i32) -> (i32, i32) {
    %c0_i32 = arith.constant 0 : i32
    %c0_i32_0 = arith.constant 0 : i32
    %c0_i32_1 = arith.constant 0 : i32
    return %c0_i32, %c0_i32_0 : i32, i32
  }
  func.func @transform_3(%arg0: i32) -> (i32, i32) {
    %c0_i32 = arith.constant 0 : i32
    %c0_i32_0 = arith.constant 0 : i32
    %c0_i32_1 = arith.constant 0 : i32
    return %c0_i32, %c0_i32_0 : i32, i32
  }
  func.func @transform_4(%arg0: i32) -> (i32, i32) {
    %c0_i32 = arith.constant 0 : i32
    %c0_i32_0 = arith.constant 0 : i32
    %c0_i32_1 = arith.constant 0 : i32
    return %c0_i32, %c0_i32_0 : i32, i32
  }
  func.func @transform_5(%arg0: i32) -> (i32, i32) {
    %c0_i32 = arith.constant 0 : i32
    %c0_i32_0 = arith.constant 0 : i32
    return %arg0, %c0_i32 : i32, i32
  }
}

</mosaic_0001>

<bundles_post_ra>
// kernel: tpu_custom_call.1
= control target key start
LH: loop header
LB: loop body
LE: loop exit
PB: predicated region body
PF: predicated region fallthrough
CT: control target
= control target key end

     0   :  { %10 = vsyncpa [#allocation3], 0  ;;  %s826_s0 = inlined_call_operand.hbm [shape: bf16[8,256], index: 0, kind: input, shape index: {}]   ;;  %s827_s1 = inlined_call_operand.hbm [shape: bf16[256,128], index: 1, kind: input, shape index: {}]   ;;  %s828_s2 = inlined_call_operand.hbm [shape: bf16[128,256], index: 2, kind: input, shape index: {}]   ;;  %s829_s3 = inlined_call_operand.hbm [shape: f32[1,128], index: 3, kind: input, shape index: {}]   ;;  %s830_s4 = inlined_call_operand.hbm [shape: f32[1,256], index: 4, kind: input, shape index: {}]   ;;  %s831_s5 = inlined_call_operand.hbm [shape: bf16[8,256], index: 5, kind: output, shape index: {}]  }
   0x1   :  { %11 = vsyncpa [#allocation6], 0 }
   0x2   :  { %12 = vsyncpa [#allocation9], 0 }
   0x3   :  { %13 = vsyncpa [#allocation4], 0  ;;  %s713_s18 = smov [#allocation5]   ;;  %s573_s22 = scalar_lea.hbm %s827_s1, 2048 }
   0x4   :  { %s29_s19 = sshll.u32 %s713_s18, 4  ;;  %p574_p0 = scmp.ne.s32.totalorder %s827_s1, %s573_s22  ;;  %s30_s19 = int_to_ptr.vmem [resolvable:$true] %s29_s19 }
   0x5   :  { %p577_p1 = scmp.lt.u32.totalorder %s573_s22, %s827_s1 }
   0x7   :  { %p579_p2 = pnand %p577_p1, %p574_p0 }
   0x9   :  { %582 = shalt.err (!%p579_p2)
}
   0xa   :  { %s583_s27 = scalar_lea.vmem %s30_s19, 2048  ;;  %p588_p4 = scmp.lt.s32.totalorder %s30_s19, %s30_s19 }
   0xb   :  { %p584_p3 = scmp.ne.s32.totalorder %s30_s19, %s583_s27  ;;  %p589_p5 = scmp.lt.s32.totalorder %s583_s27, %s583_s27 }
   0xd   :  { %p590_p6 = por %p589_p5, %p588_p4 }
   0xf   :  { %p591_p7 = pnand %p590_p6, %p584_p3 }
  0x11   :  { %594 = shalt.err (!%p591_p7)
}
  0x12   :  { %s714_s28 = smov 64   ;;  %s715_s29 = smov 4  }
  0x13   :  { %35 = dma.hbm_to_vmem [thread:$0]  %s827_s1, 2048, %s30_s19, [#allocation6], %s714_s28, %s714_s28, %s715_s29  }
  0x14   :  { %s716_s7 = smov [#allocation8]   ;;  %s717_s9 = smov [#allocation2]  }
  0x15   :  { %s54_s8 = sshll.u32 %s716_s7, 4  ;;  %s20_s10 = sshll.u32 %s717_s9, 4  ;;  %s55_s8 = int_to_ptr.vmem [resolvable:$true] %s54_s8  ;;  %s21_s10 = int_to_ptr.vmem [resolvable:$true] %s20_s10 }
  0x16   :  { %s595_s13 = scalar_lea.hbm %s829_s3, 16 }
  0x17   :  { %p596_p8 = scmp.ne.s32.totalorder %s829_s3, %s595_s13  ;;  %p599_p9 = scmp.lt.u32.totalorder %s595_s13, %s829_s3 }
  0x19   :  { %p601_p10 = pnand %p599_p9, %p596_p8 }
  0x1b   :  { %604 = shalt.err (!%p601_p10)
}
  0x1c   :  { %s605_s1 = scalar_lea.vmem %s55_s8, 16  ;;  %s609_s18 = scalar_lea.vmem %s55_s8, 32 }
  0x1d   :  { %p606_p11 = scmp.ne.s32.totalorder %s55_s8, %s605_s1  ;;  %p610_p12 = scmp.lt.s32.totalorder %s55_s8, %s55_s8 }
  0x1e   :  { %p611_p13 = scmp.lt.s32.totalorder %s609_s18, %s605_s1 }
  0x20   :  { %p612_p0 = por %p611_p13, %p610_p12 }
  0x22   :  { %p613_p1 = pnand %p612_p0, %p606_p11 }
  0x24   :  { %616 = shalt.err (!%p613_p1)
}
  0x25   :  { %57 = dma.hbm_to_vmem [thread:$0]  %s829_s3, 16, %s55_s8, [#allocation9]  }
  0x26   :  { %s617_s23 = scalar_lea.hbm %s826_s0, 128 }
  0x27   :  { %p618_p2 = scmp.ne.s32.totalorder %s826_s0, %s617_s23  ;;  %p621_p3 = scmp.lt.u32.totalorder %s617_s23, %s826_s0 }
  0x29   :  { %p623_p4 = pnand %p621_p3, %p618_p2 }
  0x2b   :  { %626 = shalt.err (!%p623_p4)
}
  0x2c   :  { %s627_s28 = scalar_lea.vmem %s21_s10, 128  ;;  %p632_p6 = scmp.lt.s32.totalorder %s21_s10, %s21_s10 }
  0x2d   :  { %p628_p5 = scmp.ne.s32.totalorder %s21_s10, %s627_s28  ;;  %p633_p7 = scmp.lt.s32.totalorder %s627_s28, %s627_s28 }
  0x2f   :  { %p634_p8 = por %p633_p7, %p632_p6 }
  0x31   :  { %p635_p9 = pnand %p634_p8, %p628_p5 }
  0x33   :  { %638 = shalt.err (!%p635_p9)
}
  0x34   :  { %23 = dma.hbm_to_vmem [thread:$0]  %s826_s0, 128, %s21_s10, [#allocation3]  }
  0x35   :  { %s718_s30 = smov [#allocation7]   ;;  %s639_s9 = scalar_lea.hbm %s828_s2, 2048 }
  0x36   :  { %s41_s6 = sshll.u32 %s718_s30, 4  ;;  %p640_p10 = scmp.ne.s32.totalorder %s828_s2, %s639_s9  ;;  %s42_s6 = int_to_ptr.vmem [resolvable:$true] %s41_s6 }
  0x37   :  { %p643_p11 = scmp.lt.u32.totalorder %s639_s9, %s828_s2 }
  0x39   :  { %p645_p12 = pnand %p643_p11, %p640_p10 }
  0x3b   :  { %648 = shalt.err (!%p645_p12)
}
  0x3c   :  { %s649_s15 = scalar_lea.vmem %s42_s6, 2048  ;;  %p654_p0 = scmp.lt.s32.totalorder %s42_s6, %s42_s6 }
  0x3d   :  { %p650_p13 = scmp.ne.s32.totalorder %s42_s6, %s649_s15  ;;  %p655_p1 = scmp.lt.s32.totalorder %s649_s15, %s649_s15 }
  0x3f   :  { %p656_p2 = por %p655_p1, %p654_p0 }
  0x41   :  { %p657_p3 = pnand %p656_p2, %p650_p13 }
  0x43   :  { %660 = shalt.err (!%p657_p3)
}
  0x44   :  { %s719_s0 = smov 128   ;;  %s720_s10 = smov 8  }
  0x45   :  { %47 = dma.hbm_to_vmem [thread:$0]  %s828_s2, 2048, %s42_s6, [#allocation6], %s719_s0, %s719_s0, %s720_s10  }
  0x46   :  { %s721_s1 = smov [#allocation10]   ;;  %s661_s21 = scalar_lea.hbm %s830_s4, 32 }
  0x47   :  { %s64_s18 = sshll.u32 %s721_s1, 4  ;;  %p662_p4 = scmp.ne.s32.totalorder %s830_s4, %s661_s21  ;;  %s65_s18 = int_to_ptr.vmem [resolvable:$true] %s64_s18 }
  0x48   :  { %p665_p5 = scmp.lt.u32.totalorder %s661_s21, %s830_s4 }
  0x4a   :  { %p667_p6 = pnand %p665_p5, %p662_p4 }
  0x4c   :  { %670 = shalt.err (!%p667_p6)
}
  0x4d   :  { %s671_s26 = scalar_lea.vmem %s65_s18, 32  ;;  %p676_p8 = scmp.lt.s32.totalorder %s65_s18, %s65_s18 }
  0x4e   :  { %p672_p7 = scmp.ne.s32.totalorder %s65_s18, %s671_s26  ;;  %p677_p9 = scmp.lt.s32.totalorder %s671_s26, %s671_s26 }
  0x50   :  { %p678_p10 = por %p677_p9, %p676_p8 }
  0x52   :  { %p679_p11 = pnand %p678_p10, %p672_p7 }
  0x54   :  { %682 = shalt.err (!%p679_p11)
}
  0x55   :  { %67 = dma.hbm_to_vmem [thread:$0]  %s830_s4, 32, %s65_s18, [#allocation9]  }
  0x56   :  { %705 = dma.done.wait [#allocation3], 128  }
  0x57   :  { %706 = vsyncadd [#allocation3], 4294967168 }
  0x58   :  { %707 = dma.done.wait [#allocation6], 4096  }
  0x59   :  { %708 = vsyncadd [#allocation6], 4294963200 }
  0x5a   :  { %709 = dma.done.wait [#allocation9], 48  }
  0x5b   :  { %710 = vsyncadd [#allocation9], 4294967248  ;;  %v525_v0 = vld [vmem:[#allocation5 + $0x40] sm:$0xff]   ;;  %v527_v2 = vld [vmem:[#allocation5 + $0x48] sm:$0xff]   ;;  %v722_v32 = vmov 0   ;;  %v290_v48 = vlaneseq  ;;  %s723_s4 = smov [#allocation11]  }
  0x5c   :  { %v526_v1 = vld [vmem:[#allocation5] sm:$0xff]   ;;  %492 = vmatprep.subr.bf16.mxu0 %v525_v0  ;;  %v528_v3 = vld [vmem:[#allocation5 + $0x8] sm:$0xff]   ;;  %v529_v4 = vld [vmem:[#allocation5 + $0x50] sm:$0xff]   ;;  %412 = vmatprep.mubr.bf16.mxu1 %v722_v32  ;;  %s444_s28 = sshll.u32 %s723_s4, 4  ;;  %s445_s28 = int_to_ptr.vmem [resolvable:$true] %s444_s28 }
  0x5d   :  { %493 = vmatpush3.bf16.msra.mxu0 %v526_v1  ;;  %v530_v5 = vld [vmem:[#allocation5 + $0x10] sm:$0xff]   ;;  %v531_v6 = vld [vmem:[#allocation5 + $0x58] sm:$0xff]   ;;  %v533_v8 = vld [vmem:[#allocation5 + $0x60] sm:$0xff]   ;;  %v291_v49 = vshrl.u32 %v290_v48, 7  ;;  %s683_s3 = scalar_lea.vmem %s445_s28, 128  ;;  %p688_p13 = scmp.lt.s32.totalorder %s445_s28, %s445_s28 }
  0x5e   :  { %494 = vmatprep.subr.bf16.mxu0 %v527_v2  ;;  %v532_v7 = vld [vmem:[#allocation5 + $0x18] sm:$0xff]   ;;  %v534_v9 = vld [vmem:[#allocation5 + $0x20] sm:$0xff]   ;;  %v535_v10 = vld [vmem:[#allocation5 + $0x68] sm:$0xff]   ;;  %p684_p12 = scmp.ne.s32.totalorder %s445_s28, %s683_s3  ;;  %p689_p0 = scmp.lt.s32.totalorder %s683_s3, %s683_s3 }
  0x5f   :  { %v84_v11 = vld [vmem:[#allocation2] sm:$0xff]  ;;  %v536_v12 = vld [vmem:[#allocation5 + $0x28] sm:$0xff]   ;;  %v537_v16 = vld [vmem:[#allocation5 + $0x70] sm:$0xff]   ;;  %v292_v50 = vsub.s32 0, %v291_v49  ;;  %v296_v52 = vsub.s32 1, %v291_v49 }
  0x60   :  { %v457_v13 = vcombine.high %v84_v11, %v84_v11  ;;  %v543_v14 = vld [vmem:[#allocation7 + $0x4] ss:$8 sps:$4 sm:$0xff]   ;;  %v545_v15 = vld [vmem:[#allocation7] ss:$8 sps:$4 sm:$0xff]   ;;  %v546_v17 = vld [vmem:[#allocation7 + $0x14] ss:$8 sps:$4 sm:$0xff]   ;;  %v456_v22 = vcombine.low %v84_v11, %v84_v11  ;;  %p690_p1 = por %p689_p0, %p688_p13 }
  0x61   :  { %495 = vmatpush3.bf16.msra.mxu0 %v528_v3  ;;  %v548_v18 = vld [vmem:[#allocation7 + $0x10] ss:$8 sps:$4 sm:$0xff]   ;;  %380 = vmatprep.subr.bf16.mxu1 %v543_v14  ;;  %v549_v23 = vld [vmem:[#allocation7 + $0x24] ss:$8 sps:$4 sm:$0xff]   ;;  %v551_v24 = vld [vmem:[#allocation7 + $0x20] ss:$8 sps:$4 sm:$0xff]  }
  0x62   :  { %496 = vmatprep.subr.bf16.mxu0 %v529_v4  ;;  %259 = vmatprep.mubr.bf16.mxu0 %v457_v13  ;;  %v538_v19 = vld [vmem:[#allocation5 + $0x30] sm:$0xff]   ;;  %v539_v20 = vld [vmem:[#allocation5 + $0x78] sm:$0xff]   ;;  %v555_v27 = vld [vmem:[#allocation7 + $0x44] ss:$8 sps:$4 sm:$0xff]   ;;  %p691_p2 = pnand %p690_p1, %p684_p12 }
  0x63   :  { %381 = vmatpush1.bf16.msra.mxu1 %v545_v15  ;;  %v540_v21 = vld [vmem:[#allocation5 + $0x38] sm:$0xff]   ;;  %v557_v28 = vld [vmem:[#allocation7 + $0x40] ss:$8 sps:$4 sm:$0xff]   ;;  %v561_v31 = vld [vmem:[#allocation7 + $0x64] ss:$8 sps:$4 sm:$0xff]  }
  0x64   :  { %382 = vmatprep.subr.bf16.mxu1 %v546_v17  ;;  %v552_v25 = vld [vmem:[#allocation7 + $0x34] ss:$8 sps:$4 sm:$0xff]   ;;  %v554_v26 = vld [vmem:[#allocation7 + $0x30] ss:$8 sps:$4 sm:$0xff]   ;;  %v563_v33 = vld [vmem:[#allocation7 + $0x60] ss:$8 sps:$4 sm:$0xff]  }
  0x65   :  { %497 = vmatpush3.bf16.msra.mxu0 %v530_v5  ;;  %v558_v29 = vld [vmem:[#allocation7 + $0x54] ss:$8 sps:$4 sm:$0xff]   ;;  %v560_v30 = vld [vmem:[#allocation7 + $0x50] ss:$8 sps:$4 sm:$0xff]   ;;  %v455_v37 = vld [vmem:[#allocation8] ss:$0 sm:$0xff] }
  0x66   :  { %498 = vmatprep.subr.bf16.mxu0 %v531_v6  ;;  %v564_v34 = vld [vmem:[#allocation7 + $0x74] ss:$8 sps:$4 sm:$0xff]   ;;  %v566_v35 = vld [vmem:[#allocation7 + $0x70] ss:$8 sps:$4 sm:$0xff]   ;;  %v288_v51 = vld [vmem:[#allocation10] sm:$0x3] }
  0x67   :  { %383 = vmatpush1.bf16.msra.mxu1 %v548_v18  ;;  %v293_v53 = vrot.slane %v288_v51, %v292_v50  ;;  %v297_v54 = vrot.slane %v288_v51, %v296_v52 }
  0x68   :  { %384 = vmatprep.subr.bf16.mxu1 %v549_v23 }
  0x69   :  { %499 = vmatpush3.bf16.msra.mxu0 %v532_v7 }
  0x6a   :  { %500 = vmatprep.subr.bf16.mxu0 %v533_v8 }
  0x6b   :  { %385 = vmatpush1.bf16.msra.mxu1 %v551_v24 }
  0x6c   :  { %386 = vmatprep.subr.bf16.mxu1 %v552_v25 }
  0x6d   :  { %501 = vmatpush3.bf16.msra.mxu0 %v534_v9 }
  0x6e   :  { %502 = vmatprep.subr.bf16.mxu0 %v535_v10 }
  0x6f   :  { %387 = vmatpush1.bf16.msra.mxu1 %v554_v26 }
  0x70   :  { %388 = vmatprep.subr.bf16.mxu1 %v555_v27 }
  0x71   :  { %503 = vmatpush3.bf16.msra.mxu0 %v536_v12 }
  0x72   :  { %504 = vmatprep.subr.bf16.mxu0 %v537_v16 }
  0x73   :  { %389 = vmatpush1.bf16.msra.mxu1 %v557_v28 }
  0x74   :  { %390 = vmatprep.subr.bf16.mxu1 %v558_v29 }
  0x75   :  { %505 = vmatpush3.bf16.msra.mxu0 %v538_v19 }
  0x76   :  { %506 = vmatprep.subr.bf16.mxu0 %v539_v20 }
  0x77   :  { %391 = vmatpush1.bf16.msra.mxu1 %v560_v30 }
  0x78   :  { %392 = vmatprep.subr.bf16.mxu1 %v561_v31 }
  0x79   :  { %507 = vmatpush3.bf16.msra.mxu0 %v540_v21 }
  0x7b   :  { %393 = vmatpush1.bf16.msra.mxu1 %v563_v33 }
  0x7c   :  { %260 = vmatmul.mubr.bf16.vlgmr.msra.gmra.mrb[0].mxu0 %v456_v22  ;;  %394 = vmatprep.subr.bf16.mxu1 %v564_v34 }
  0x7f   :  { %395 = vmatpush1.bf16.msra.mxu1 %v566_v35 }
 0x14f   :  { %v508_v36 = vpop.f32.mrb[0].mxu0 }
 0x150   :  { %v509_v38 = vpop.f32.mrb[1].mxu0 }
 0x151   :  { %v510_v39 = vadd.f32 %v509_v38, %v508_v36  ;;  %v511_v40 = vpop.f32.mrb[2].mxu0 }
 0x152   :  { %v512_v41 = vpop.f32.mrb[3].mxu0 }
 0x153   :  { %v262_v42 = vadd.f32 %v510_v39, %v455_v37 }
 0x155   :  { %v267_v43 = vmul.f32 0.5, %v262_v42 }
 0x157   :  { %567 = vtanh.f32 %v267_v43 }
 0x161   :  { %v568_v44 = vpop.eup %567 }
 0x162   :  { %v269_v45 = vmul.f32 0.5, %v568_v44 }
 0x164   :  { %v270_v46 = vadd.f32 0.5, %v269_v45 }
 0x166   :  { %v271_v47 = vpack.c.bf16 %v270_v46, %v270_v46 }
 0x168   :  { %413 = vmatmul.mubr.bf16.vlgmr.msra.gmra.mrb[0].mxu1 %v271_v47 }
 0x23b   :  { %v414_v55 = vpop.f32.mrb[0].mxu1 }
 0x23c   :  { %v415_v56 = vadd.f32 %v414_v55, %v293_v53  ;;  %v416_v57 = vpop.f32.mrb[1].mxu1 }
 0x23d   :  { %v417_v58 = vadd.f32 %v416_v57, %v297_v54  ;;  %v418_v59 = vpop.f32.mrb[2].mxu1 }
 0x23e   :  { %v421_v60 = vmul.f32 0.5, %v415_v56  ;;  %v419_v61 = vpop.f32.mrb[3].mxu1 }
 0x23f   :  { %v422_v62 = vmul.f32 0.5, %v417_v58 }
 0x240   :  { %569 = vtanh.f32 %v421_v60 }
 0x241   :  { %571 = vtanh.f32 %v422_v62 }
 0x24a   :  { %v570_v63 = vpop.eup %569 }
 0x24b   :  { %v572_v0 = vpop.eup %571  ;;  %v425_v1 = vmul.f32 0.5, %v570_v63 }
 0x24c   :  { %v426_v2 = vmul.f32 0.5, %v572_v0 }
 0x24d   :  { %v427_v3 = vadd.f32 0.5, %v425_v1 }
 0x24e   :  { %v428_v4 = vadd.f32 0.5, %v426_v2 }
 0x250   :  { %v491_v5 = vpack.c.bf16 %v428_v4, %v427_v3 }
 0x252   :  { %437 = vst [vmem:[#allocation11] sm:$0xff] %v491_v5 }
 0x253   :  { %694 = shalt.err (!%p691_p2)
}
 0x254   :  { %s695_s6 = scalar_lea.hbm %s831_s5, 128 }
 0x255   :  { %p696_p3 = scmp.ne.s32.totalorder %s831_s5, %s695_s6  ;;  %p699_p4 = scmp.lt.u32.totalorder %s695_s6, %s831_s5 }
 0x257   :  { %p701_p5 = pnand %p699_p4, %p696_p3 }
 0x259   :  { %704 = shalt.err (!%p701_p5)
}
 0x25a   :  { %447 = dma.vmem_to_hbm [thread:$0]  %s445_s28, 128, %s831_s5, [#allocation4]  }
 0x25b   :  { %711 = dma.done.wait [#allocation4], 128  }
 0x25c   :  { %712 = vsyncadd [#allocation4], 4294967168 }
 0x25d   :  { %451 = vsyncpa [#allocation3], 1 }
 0x25e   :  { %452 = vsyncpa [#allocation6], 1 }
 0x25f   :  { %453 = vsyncpa [#allocation9], 1 }
 0x260   :  { %454 = vsyncpa [#allocation4], 1 }

</bundles_post_ra>
